<compile_context>
chip_gen: v5e
topology: v5e:2x2
jax: 0.10.0
libtpu: 0.0.40
codegen_flags: <defaults>
</compile_context>

<pallas_src>
import math
import functools

import jax
import jax.numpy as jnp
from jax.experimental import pallas as pl
from jax.experimental.pallas import tpu as pltpu


def _round_up(x, m):
    return ((x + m - 1) // m) * m


def context_mlp_kernel(
    x_ref, film_ref,
    w1_ref, b1_ref, w2_ref, b2_ref, w3_ref, b3_ref,
    out_ref,
    *, n_hidden,
):
    H = n_hidden
    x = x_ref[...]
    film = film_ref[...]                 # [TB, 4H], already L2-normalized per chunk
    gamma1 = film[:, 0 * H:1 * H]
    beta1 = film[:, 1 * H:2 * H]
    gamma2 = film[:, 2 * H:3 * H]
    beta2 = film[:, 3 * H:4 * H]

    # ---- layer 1 + FiLM 1 ----
    h1 = jnp.dot(x, w1_ref[...], preferred_element_type=jnp.float32) + b1_ref[...]
    h1 = jnp.maximum(h1, 0.0) + jnp.maximum(gamma1 * h1 + beta1, 0.0)

    # ---- layer 2 + FiLM 2 ----
    h2 = jnp.dot(h1, w2_ref[...], preferred_element_type=jnp.float32) + b2_ref[...]
    h2 = jnp.maximum(h2, 0.0) + jnp.maximum(gamma2 * h2 + beta2, 0.0)

    # ---- layer 3 (lane-dense: w3/b3 are padded to 128 output lanes) ----
    out_ref[...] = (
        jnp.dot(h2, w3_ref[...], preferred_element_type=jnp.float32) + b3_ref[...]
    )


def context_mlp_forward(x, t_ids, params, *, tb=2048):
    """x: [B, n_in] f32; t_ids: int task ids, length 1 (broadcast) or length B.

    FiLM is precomputed per-task in JAX and gathered per row; the Pallas kernel
    runs the three matmuls + FiLM modulation over batch tiles, with all weights
    VMEM-resident (constant index_map) across the grid.
    """
    B, n_in = x.shape
    n_hidden = params["w1"].shape[1]
    n_out = params["w3"].shape[1]

    # --- task ids -> per-row pre-normalized FiLM slab [B, 4H] (plain JAX glue) ---
    t_ids = jnp.asarray(t_ids, jnp.int32)
    if t_ids.shape[0] == 1:
        t_ids = jnp.broadcast_to(t_ids, (B,))
    wf_all = jnp.concatenate(
        [params["wf1_g"], params["wf1_b"], params["wf2_g"], params["wf2_b"]], axis=1)
    bf_all = jnp.concatenate(
        [params["bf1_g"], params["bf1_b"], params["bf2_g"], params["bf2_b"]], axis=1)
    film_tab = params["emb"] @ wf_all + bf_all                      # [n_tasks, 4H]
    ft = film_tab.reshape(-1, 4, n_hidden)
    ft = ft / jnp.sqrt(jnp.sum(ft * ft, axis=-1, keepdims=True))    # L2 per H-chunk
    film_tab = ft.reshape(-1, 4 * n_hidden)
    film = film_tab[t_ids]                                          # [B, 4H] gather

    # --- lane-dense output: pad w3/b3 to a multiple of 128 lanes ---
    n_out_pad = _round_up(n_out, 128)
    w3p = jnp.pad(params["w3"], ((0, 0), (0, n_out_pad - n_out)))
    b3p = jnp.pad(params["b3"], ((0, 0), (0, n_out_pad - n_out)))

    # --- batch tiling ---
    tb = _round_up(max(int(tb), 8), 8)
    b8 = _round_up(B, 8)
    tile_b = min(tb, b8)
    # v7x megacore: for sizable batches keep >=2 grid steps so the "parallel"
    # batch axis can be split across the 2 TensorCores (irrelevant on v5e/v6e).
    if b8 >= 1024 and b8 <= tile_b:
        tile_b = _round_up(pl.cdiv(b8, 2), 8)
    Bp = _round_up(B, tile_b)
    if Bp != B:
        # Zero padding is safe: no normalization happens in-kernel, and padded
        # rows are discarded by the final slice.
        x = jnp.pad(x, ((0, Bp - B), (0, 0)))
        film = jnp.pad(film, ((0, Bp - B), (0, 0)))

    grid = (Bp // tile_b,)
    const = lambda i: (0, 0)  # weights/biases: same block every step (VMEM-resident)

    kernel = functools.partial(context_mlp_kernel, n_hidden=n_hidden)

    out = pl.pallas_call(
        kernel,
        out_shape=jax.ShapeDtypeStruct((Bp, n_out_pad), jnp.float32),
        grid_spec=pltpu.PrefetchScalarGridSpec(
            num_scalar_prefetch=0,
            grid=grid,
            in_specs=[
                pl.BlockSpec((tile_b, n_in), lambda i: (i, 0)),           # x
                pl.BlockSpec((tile_b, 4 * n_hidden), lambda i: (i, 0)),   # film
                pl.BlockSpec((n_in, n_hidden), const),                    # w1
                pl.BlockSpec((1, n_hidden), const),                       # b1
                pl.BlockSpec((n_hidden, n_hidden), const),                # w2
                pl.BlockSpec((1, n_hidden), const),                       # b2
                pl.BlockSpec((n_hidden, n_out_pad), const),               # w3 (padded)
                pl.BlockSpec((1, n_out_pad), const),                      # b3 (padded)
            ],
            out_specs=pl.BlockSpec((tile_b, n_out_pad), lambda i: (i, 0)),
        ),
        compiler_params=pltpu.CompilerParams(
            dimension_semantics=("parallel",),   # megacore sharding on v7x
        ),
    )(x, film,
      params["w1"], params["b1"], params["w2"], params["b2"], w3p, b3p)

    return out[:B, :n_out]


def xavier_uniform(key, fan_in, fan_out):
    """Matches Xavier() in the reference: std = sqrt(2/(fan_in+fan_out)), a = sqrt(3)*std."""
    std = 1.0 * math.sqrt(2.0 / (fan_in + fan_out))
    a = math.sqrt(3.0) * std
    # stored as [in, out] (transposed relative to PyTorch's [out, in]) for x @ W.
    return jax.random.uniform(key, (fan_in, fan_out), jnp.float32, minval=-a, maxval=a)


def init_params(key, n_in, n_hidden, n_out, task_emb, n_tasks):
    keys = jax.random.split(key, 6)
    params = {}
    params["w1"] = xavier_uniform(keys[0], n_in, n_hidden)
    params["b1"] = jnp.zeros((1, n_hidden), jnp.float32)
    params["w2"] = xavier_uniform(keys[1], n_hidden, n_hidden)
    params["b2"] = jnp.zeros((1, n_hidden), jnp.float32)
    params["w3"] = xavier_uniform(keys[2], n_hidden, n_out)
    params["b3"] = jnp.zeros((1, n_out), jnp.float32)
    # film layers: Linear(task_emb, 2*n_hidden); split into gamma/beta halves.
    wf1 = xavier_uniform(keys[3], task_emb, 2 * n_hidden)
    params["wf1_g"] = wf1[:, :n_hidden]
    params["wf1_b"] = wf1[:, n_hidden:]
    params["bf1_g"] = jnp.zeros((1, n_hidden), jnp.float32)
    params["bf1_b"] = jnp.zeros((1, n_hidden), jnp.float32)
    wf2 = xavier_uniform(keys[4], task_emb, 2 * n_hidden)
    params["wf2_g"] = wf2[:, :n_hidden]
    params["wf2_b"] = wf2[:, n_hidden:]
    params["bf2_g"] = jnp.zeros((1, n_hidden), jnp.float32)
    params["bf2_b"] = jnp.zeros((1, n_hidden), jnp.float32)
    # Embedding(n_tasks, task_emb): PyTorch default init is N(0, 1).
    params["emb"] = jax.random.normal(keys[5], (n_tasks, task_emb), jnp.float32)
    return params


def reference_forward(x, t_ids, params):
    """Pure-JAX reference (per-row FiLM, sqrt-then-divide) for correctness check."""
    t_ids = jnp.asarray(t_ids, jnp.int32)
    if t_ids.shape[0] == 1:
        t_ids = jnp.broadcast_to(t_ids, (x.shape[0],))
    t_emb = params["emb"][t_ids]

    def film(h, wg, bg, wb, bb):
        g = t_emb @ wg + bg
        b = t_emb @ wb + bb
        g = g / jnp.linalg.norm(g, axis=1, keepdims=True)
        b = b / jnp.linalg.norm(b, axis=1, keepdims=True)
        return g * h + b

    h1 = x @ params["w1"] + params["b1"]
    h1n = film(h1, params["wf1_g"], params["bf1_g"], params["wf1_b"], params["bf1_b"])
    h1 = jax.nn.relu(h1) + jax.nn.relu(h1n)
    h2 = h1 @ params["w2"] + params["b2"]
    h2n = film(h2, params["wf2_g"], params["bf2_g"], params["wf2_b"], params["bf2_b"])
    h2 = jax.nn.relu(h2) + jax.nn.relu(h2n)
    return h2 @ params["w3"] + params["b3"]


if __name__ == "__main__":
    n_in, n_hidden, n_out = 32, 32, 16
    task_emb, n_tasks = 16, 20

    key = jax.random.PRNGKey(0)
    kp, kx, kt = jax.random.split(key, 3)
    params = init_params(kp, n_in, n_hidden, n_out, task_emb, n_tasks)

    # --- small-batch check, single task id broadcast (mirrors `len(t) == 1`) ---
    batch = 8
    x = jax.random.normal(kx, (batch, n_in), jnp.float32)
    t_ids = jnp.array([3], dtype=jnp.int32)
    out = jax.block_until_ready(context_mlp_forward(x, t_ids, params))
    ref = reference_forward(x, t_ids, params)
    assert out.shape == (batch, n_out)
    assert jnp.allclose(out, ref, atol=1e-5, rtol=1e-5), "mismatch vs reference (B=8)"

    # --- larger batch exercising multiple grid steps + batch padding ---
    batch2 = 200
    x2 = jax.random.normal(kt, (batch2, n_in), jnp.float32)
    t_ids2 = jnp.arange(batch2, dtype=jnp.int32) % n_tasks
    out2 = jax.block_until_ready(context_mlp_forward(x2, t_ids2, params, tb=128))
    ref2 = reference_forward(x2, t_ids2, params)
    assert out2.shape == (batch2, n_out)
    assert jnp.allclose(out2, ref2, atol=1e-5, rtol=1e-5), "mismatch vs reference (B=200)"

    print("KERNEL_OK")
</pallas_src>

<mosaic_0001>
module attributes {stable_mosaic.version = 11 : i64} {
  func.func @context_mlp_kernel(%arg0: i32, %arg1: memref<8x32xf32, #tpu.memory_space<vmem>>, %arg2: memref<8x128xf32, #tpu.memory_space<vmem>>, %arg3: memref<32x32xf32, #tpu.memory_space<vmem>>, %arg4: memref<1x32xf32, #tpu.memory_space<vmem>>, %arg5: memref<32x32xf32, #tpu.memory_space<vmem>>, %arg6: memref<1x32xf32, #tpu.memory_space<vmem>>, %arg7: memref<32x128xf32, #tpu.memory_space<vmem>>, %arg8: memref<1x128xf32, #tpu.memory_space<vmem>>, %arg9: memref<8x128xf32, #tpu.memory_space<vmem>>) attributes {dimension_semantics = [#tpu.dimension_semantics<parallel>], iteration_bounds = array<i64: 1>, scalar_prefetch = 0 : i64, scratch_operands = 0 : i64, tpu.core_type = #tpu.core_type<tc>, window_params = [{transform_indices = @transform_0, window_bounds = array<i64: 8, 32>}, {transform_indices = @transform_1, window_bounds = array<i64: 8, 128>}, {pipeline_mode = #tpu.pipeline_mode<synchronous>, transform_indices = @transform_2, window_bounds = array<i64: 32, 32>}, {pipeline_mode = #tpu.pipeline_mode<synchronous>, transform_indices = @transform_3, window_bounds = array<i64: 1, 32>}, {pipeline_mode = #tpu.pipeline_mode<synchronous>, transform_indices = @transform_4, window_bounds = array<i64: 32, 32>}, {pipeline_mode = #tpu.pipeline_mode<synchronous>, transform_indices = @transform_5, window_bounds = array<i64: 1, 32>}, {pipeline_mode = #tpu.pipeline_mode<synchronous>, transform_indices = @transform_6, window_bounds = array<i64: 32, 128>}, {pipeline_mode = #tpu.pipeline_mode<synchronous>, transform_indices = @transform_7, window_bounds = array<i64: 1, 128>}, {transform_indices = @transform_8, window_bounds = array<i64: 8, 128>}]} {
    %c0 = arith.constant 0 : index
    %c0_0 = arith.constant 0 : index
    %0 = vector.load %arg1[%c0, %c0_0] : memref<8x32xf32, #tpu.memory_space<vmem>>, vector<8x32xf32>
    %c0_1 = arith.constant 0 : index
    %c0_2 = arith.constant 0 : index
    %1 = vector.load %arg2[%c0_1, %c0_2] : memref<8x128xf32, #tpu.memory_space<vmem>>, vector<8x128xf32>
    %2 = vector.extract_strided_slice %1 {offsets = [0, 0], sizes = [8, 32], strides = [1, 1]} : vector<8x128xf32> to vector<8x32xf32>
    %3 = vector.extract_strided_slice %1 {offsets = [0, 32], sizes = [8, 32], strides = [1, 1]} : vector<8x128xf32> to vector<8x32xf32>
    %4 = vector.extract_strided_slice %1 {offsets = [0, 64], sizes = [8, 32], strides = [1, 1]} : vector<8x128xf32> to vector<8x32xf32>
    %5 = vector.extract_strided_slice %1 {offsets = [0, 96], sizes = [8, 32], strides = [1, 1]} : vector<8x128xf32> to vector<8x32xf32>
    %c0_3 = arith.constant 0 : index
    %c0_4 = arith.constant 0 : index
    %6 = vector.load %arg3[%c0_3, %c0_4] : memref<32x32xf32, #tpu.memory_space<vmem>>, vector<32x32xf32>
    %cst = arith.constant dense<0.000000e+00> : vector<8x32xf32>
    %7 = tpu.matmul %0, %6, %cst {dimension_numbers = #tpu.dot_dimension_numbers<[1], [0], [0], [1], [0, 0, 1, 1], [], []>} : vector<8x32xf32>, vector<32x32xf32>, vector<8x32xf32> -> vector<8x32xf32>
    %c0_5 = arith.constant 0 : index
    %c0_6 = arith.constant 0 : index
    %8 = vector.load %arg4[%c0_5, %c0_6] : memref<1x32xf32, #tpu.memory_space<vmem>>, vector<1x32xf32>
    %9 = vector.broadcast %8 : vector<1x32xf32> to vector<8x32xf32>
    %10 = arith.addf %7, %9 : vector<8x32xf32>
    %cst_7 = arith.constant 0.000000e+00 : f32
    %11 = vector.broadcast %cst_7 : f32 to vector<8x32xf32>
    %12 = arith.maximumf %10, %11 : vector<8x32xf32>
    %13 = arith.mulf %2, %10 : vector<8x32xf32>
    %14 = arith.addf %13, %3 : vector<8x32xf32>
    %cst_8 = arith.constant 0.000000e+00 : f32
    %15 = vector.broadcast %cst_8 : f32 to vector<8x32xf32>
    %16 = arith.maximumf %14, %15 : vector<8x32xf32>
    %17 = arith.addf %12, %16 : vector<8x32xf32>
    %c0_9 = arith.constant 0 : index
    %c0_10 = arith.constant 0 : index
    %18 = vector.load %arg5[%c0_9, %c0_10] : memref<32x32xf32, #tpu.memory_space<vmem>>, vector<32x32xf32>
    %cst_11 = arith.constant dense<0.000000e+00> : vector<8x32xf32>
    %19 = tpu.matmul %17, %18, %cst_11 {dimension_numbers = #tpu.dot_dimension_numbers<[1], [0], [0], [1], [0, 0, 1, 1], [], []>} : vector<8x32xf32>, vector<32x32xf32>, vector<8x32xf32> -> vector<8x32xf32>
    %c0_12 = arith.constant 0 : index
    %c0_13 = arith.constant 0 : index
    %20 = vector.load %arg6[%c0_12, %c0_13] : memref<1x32xf32, #tpu.memory_space<vmem>>, vector<1x32xf32>
    %21 = vector.broadcast %20 : vector<1x32xf32> to vector<8x32xf32>
    %22 = arith.addf %19, %21 : vector<8x32xf32>
    %cst_14 = arith.constant 0.000000e+00 : f32
    %23 = vector.broadcast %cst_14 : f32 to vector<8x32xf32>
    %24 = arith.maximumf %22, %23 : vector<8x32xf32>
    %25 = arith.mulf %4, %22 : vector<8x32xf32>
    %26 = arith.addf %25, %5 : vector<8x32xf32>
    %cst_15 = arith.constant 0.000000e+00 : f32
    %27 = vector.broadcast %cst_15 : f32 to vector<8x32xf32>
    %28 = arith.maximumf %26, %27 : vector<8x32xf32>
    %29 = arith.addf %24, %28 : vector<8x32xf32>
    %c0_16 = arith.constant 0 : index
    %c0_17 = arith.constant 0 : index
    %30 = vector.load %arg7[%c0_16, %c0_17] : memref<32x128xf32, #tpu.memory_space<vmem>>, vector<32x128xf32>
    %cst_18 = arith.constant dense<0.000000e+00> : vector<8x128xf32>
    %31 = tpu.matmul %29, %30, %cst_18 {dimension_numbers = #tpu.dot_dimension_numbers<[1], [0], [0], [1], [0, 0, 1, 1], [], []>} : vector<8x32xf32>, vector<32x128xf32>, vector<8x128xf32> -> vector<8x128xf32>
    %c0_19 = arith.constant 0 : index
    %c0_20 = arith.constant 0 : index
    %32 = vector.load %arg8[%c0_19, %c0_20] : memref<1x128xf32, #tpu.memory_space<vmem>>, vector<1x128xf32>
    %33 = vector.broadcast %32 : vector<1x128xf32> to vector<8x128xf32>
    %34 = arith.addf %31, %33 : vector<8x128xf32>
    %c0_21 = arith.constant 0 : index
    %c0_22 = arith.constant 0 : index
    %35 = vector.load %arg9[%c0_21, %c0_22] : memref<8x128xf32, #tpu.memory_space<vmem>>, vector<8x128xf32>
    tpu.vector_store %arg9[%c0_21, %c0_22], %34 {strides = array<i32>} : memref<8x128xf32, #tpu.memory_space<vmem>>, vector<8x128xf32>,
    return
  }
  func.func @transform_0(%arg0: i32) -> (i32, i32) {
    %c0_i32 = arith.constant 0 : i32
    %c0_i32_0 = arith.constant 0 : i32
    return %arg0, %c0_i32 : i32, i32
  }
  func.func @transform_1(%arg0: i32) -> (i32, i32) {
    %c0_i32 = arith.constant 0 : i32
    %c0_i32_0 = arith.constant 0 : i32
    return %arg0, %c0_i32 : i32, i32
  }
  func.func @transform_2(%arg0: i32) -> (i32, i32) {
    %c0_i32 = arith.constant 0 : i32
    %c0_i32_0 = arith.constant 0 : i32
    %c0_i32_1 = arith.constant 0 : i32
    return %c0_i32, %c0_i32_0 : i32, i32
  }
  func.func @transform_3(%arg0: i32) -> (i32, i32) {
    %c0_i32 = arith.constant 0 : i32
    %c0_i32_0 = arith.constant 0 : i32
    %c0_i32_1 = arith.constant 0 : i32
    return %c0_i32, %c0_i32_0 : i32, i32
  }
  func.func @transform_4(%arg0: i32) -> (i32, i32) {
    %c0_i32 = arith.constant 0 : i32
    %c0_i32_0 = arith.constant 0 : i32
    %c0_i32_1 = arith.constant 0 : i32
    return %c0_i32, %c0_i32_0 : i32, i32
  }
  func.func @transform_5(%arg0: i32) -> (i32, i32) {
    %c0_i32 = arith.constant 0 : i32
    %c0_i32_0 = arith.constant 0 : i32
    %c0_i32_1 = arith.constant 0 : i32
    return %c0_i32, %c0_i32_0 : i32, i32
  }
  func.func @transform_6(%arg0: i32) -> (i32, i32) {
    %c0_i32 = arith.constant 0 : i32
    %c0_i32_0 = arith.constant 0 : i32
    %c0_i32_1 = arith.constant 0 : i32
    return %c0_i32, %c0_i32_0 : i32, i32
  }
  func.func @transform_7(%arg0: i32) -> (i32, i32) {
    %c0_i32 = arith.constant 0 : i32
    %c0_i32_0 = arith.constant 0 : i32
    %c0_i32_1 = arith.constant 0 : i32
    return %c0_i32, %c0_i32_0 : i32, i32
  }
  func.func @transform_8(%arg0: i32) -> (i32, i32) {
    %c0_i32 = arith.constant 0 : i32
    %c0_i32_0 = arith.constant 0 : i32
    return %arg0, %c0_i32 : i32, i32
  }
}

</mosaic_0001>

<bundles_post_ra>
// kernel: tpu_custom_call.1
= control target key start
LH: loop header
LB: loop body
LE: loop exit
PB: predicated region body
PF: predicated region fallthrough
CT: control target
= control target key end

     0   :  { %13 = vsyncpa [#allocation3], 0  ;;  %s495_s0 = inlined_call_operand.hbm [shape: f32[8,32], index: 0, kind: input, shape index: {}]   ;;  %s496_s1 = inlined_call_operand.hbm [shape: f32[8,128], index: 1, kind: input, shape index: {}]   ;;  %s497_s2 = inlined_call_operand.hbm [shape: f32[32,32], index: 2, kind: input, shape index: {}]   ;;  %s498_s3 = inlined_call_operand.vmem [shape: f32[1,32], index: 3, kind: input, shape index: {}]   ;;  %s499_s4 = inlined_call_operand.hbm [shape: f32[32,32], index: 4, kind: input, shape index: {}]   ;;  %s500_s5 = inlined_call_operand.vmem [shape: f32[1,32], index: 5, kind: input, shape index: {}]   ;;  %s501_s6 = inlined_call_operand.hbm [shape: f32[32,128], index: 6, kind: input, shape index: {}]   ;;  %s502_s7 = inlined_call_operand.vmem [shape: f32[1,128], index: 7, kind: input, shape index: {}]   ;;  %s503_s8 = inlined_call_operand.hbm [shape: f32[8,128], index: 8, kind: output, shape index: {}]  }
   0x1   :  { %14 = vsyncpa [#allocation6], 0 }
   0x2   :  { %15 = vsyncpa [#allocation9], 0  ;;  %s33_s29 = sshll.u32 %s496_s1, 4  ;;  %s34_s29 = int_to_ptr.hbm [resolvable:$true] %s33_s29 }
   0x3   :  { %16 = vsyncpa [#allocation4], 0  ;;  %s410_s30 = smov [#allocation5]   ;;  %s58_s12 = sshll.u32 %s499_s4, 4  ;;  %s59_s12 = int_to_ptr.hbm [resolvable:$true] %s58_s12 }
   0x4   :  { %s35_s9 = sshll.u32 %s410_s30, 4  ;;  %s411_s13 = smov [#allocation8]   ;;  %s36_s9 = int_to_ptr.vmem [resolvable:$true] %s35_s9 }
   0x5   :  { %38 = dma.hbm_to_vmem [thread:$0]  %s34_s29, 128, %s36_s9, [#allocation6]  }
   0x6   :  { %s60_s14 = sshll.u32 %s411_s13, 4  ;;  %s22_s17 = sshll.u32 %s495_s0, 4  ;;  %s61_s14 = int_to_ptr.vmem [resolvable:$true] %s60_s14  ;;  %s23_s17 = int_to_ptr.hbm [resolvable:$true] %s22_s17 }
   0x7   :  { %s412_s1 = smov 128   ;;  %s413_s18 = smov 8  }
   0x8   :  { %66 = dma.hbm_to_vmem [thread:$0]  %s59_s12, 512, %s61_s14, [#allocation9], %s412_s1, %s412_s1, %s413_s18  }
   0x9   :  { %s43_s21 = sshll.u32 %s497_s2, 4  ;;  %s414_s22 = smov [#allocation2]   ;;  %s44_s21 = int_to_ptr.hbm [resolvable:$true] %s43_s21 }
   0xa   :  { %s24_s23 = sshll.u32 %s414_s22, 4  ;;  %s415_s4 = smov [#allocation7]   ;;  %s25_s23 = int_to_ptr.vmem [resolvable:$true] %s24_s23 }
   0xb   :  { %27 = dma.hbm_to_vmem [thread:$0]  %s23_s17, 128, %s25_s23, [#allocation3]  }
   0xc   :  { %s45_s24 = sshll.u32 %s415_s4, 4  ;;  %s73_s0 = sshll.u32 %s501_s6, 4  ;;  %s46_s24 = int_to_ptr.vmem [resolvable:$true] %s45_s24  ;;  %s74_s0 = int_to_ptr.hbm [resolvable:$true] %s73_s0 }
   0xd   :  { %51 = dma.hbm_to_vmem [thread:$0]  %s44_s21, 512, %s46_s24, [#allocation6], %s412_s1, %s412_s1, %s413_s18  }
   0xe   :  { %s416_s27 = smov [#allocation10]  }
   0xf   :  { %s75_s28 = sshll.u32 %s416_s27, 4  ;;  %s76_s28 = int_to_ptr.vmem [resolvable:$true] %s75_s28 }
  0x10   :  { %81 = dma.hbm_to_vmem [thread:$0]  %s74_s0, 512, %s76_s28, [#allocation9], %s412_s1, %s412_s1, %s413_s18  }
  0x11   :  { %402 = dma.done.wait [#allocation3], 128  }
  0x12   :  { %403 = vsyncadd [#allocation3], 4294967168 }
  0x13   :  { %404 = dma.done.wait [#allocation6], 640  }
  0x14   :  { %405 = vsyncadd [#allocation6], 4294966656 }
  0x15   :  { %406 = dma.done.wait [#allocation9], 1024  }
  0x16   :  { %407 = vsyncadd [#allocation9], 4294966272  ;;  %v109_v0 = vld [vmem:[#allocation7 + $0x18] sm:$0xff]  ;;  %v108_v1 = vld [vmem:[#allocation7 + $0x10] sm:$0xff]  ;;  %s417_s2 = smov 96   ;;  %vm114_vm0 = vcmask 261120  }
  0x17   :  { %130 = vmatpush.msra.mxu0 %v109_v0  ;;  %v105_v2 = vld [vmem:[#allocation5] sm:$0xff]  ;;  %v107_v3 = vld [vmem:[#allocation7 + $0x8] sm:$0xff]  ;;  %v106_v4 = vld [vmem:[#allocation7] sm:$0xff]  ;;  %s418_s10 = smov 64   ;;  %s419_s11 = smov [#allocation11]  }
  0x18   :  { %141 = vrot.lane.b32.xlu0 %v105_v2, %s417_s2  ;;  %v104_v5 = vld [vmem:[#allocation2] sm:$0xff]  ;;  %v150_v6 = vld [vmem:[#allocation8 + $0x18] sm:$0xff]  ;;  %v148_v8 = vld [vmem:[#allocation8 + $0x8] sm:$0xff]  ;;  %s228_s12 = sshll.u32 %s419_s11, 4  ;;  %s230_s15 = sshll.u32 %s503_s8, 4  ;;  %s229_s12 = int_to_ptr.vmem [resolvable:$true] %s228_s12  ;;  %s231_s15 = int_to_ptr.hbm [resolvable:$true] %s230_s15 }
  0x19   :  { %131 = vmatpush.msra.mxu0 %v108_v1  ;;  %170 = vmatpush.msra.mxu1 %v150_v6  ;;  %v149_v7 = vld [vmem:[#allocation8 + $0x10] sm:$0xff]  ;;  %v147_v9 = vld [vmem:[#allocation8] sm:$0xff]  ;;  %v194_v22 = vld [vmem:[#allocation10 + $0x18] sm:$0xff] }
  0x1a   :  { %v255_v10 = vld [vmem:[%s498_s3] ss:$0 sm:$0xff]  ;;  %214 = vmatpush.msra.mxu2 %v194_v22  ;;  %v192_v24 = vld [vmem:[#allocation10 + $0x8] sm:$0xff]  ;;  %v191_v29 = vld [vmem:[#allocation10] sm:$0xff] }
  0x1b   :  { %132 = vmatpush.msra.mxu0 %v107_v3  ;;  %171 = vmatpush.msra.mxu1 %v149_v7  ;;  %v256_v19 = vld [vmem:[%s500_s5] ss:$0 sm:$0xff] }
  0x1c   :  { %v193_v23 = vld [vmem:[#allocation10 + $0x10] sm:$0xff] }
  0x1d   :  { %133 = vmatpush.msra.mxu0 %v106_v4  ;;  %172 = vmatpush.msra.mxu1 %v148_v8  ;;  %v257_v33 = vld [vmem:[%s502_s7] ss:$0 sm:$0xff] }
  0x1e   :  { %242 = vmatmul.msk.f32.vlgmr.msra.gmra.mxu0 %vm114_vm0, %v104_v5  ;;  %215 = vmatpush.msra.mxu2 %v193_v23 }
  0x1f   :  { %173 = vmatpush.msra.mxu1 %v147_v9 }
  0x20   :  { %216 = vmatpush.msra.mxu2 %v192_v24 }
  0x22   :  { %217 = vmatpush.msra.mxu2 %v191_v29 }
  0x8a   :  { %v142_v13 = vpop.permute.xlu0 %141 }
  0x9b   :  { %v135_v11 = vpop.f32.mrf.mxu0 }
  0x9c   :  { %v136_v12 = vadd.f32 %v255_v10, %v135_v11 }
  0x9e   :  { %v139_v14 = vmul.f32 %v136_v12, %v105_v2  ;;  %v138_v16 = vmax.f32 %v136_v12, 0.0 }
  0xa0   :  { %v144_v15 = vadd.f32 %v142_v13, %v139_v14 }
  0xa2   :  { %v145_v17 = vmax.f32 %v144_v15, 0.0 }
  0xa4   :  { %v146_v18 = vadd.f32 %v145_v17, %v138_v16 }
  0xa6   :  { %243 = vmatmul.msk.f32.vlgmr.msra.gmra.mxu1 %vm114_vm0, %v146_v18 }
 0x123   :  { %v175_v20 = vpop.f32.mrf.mxu1 }
 0x124   :  { %v176_v21 = vadd.f32 %v256_v19, %v175_v20 }
 0x126   :  { %180 = vrot.lane.b32.xlu0 %v176_v21, %s418_s10  ;;  %v178_v30 = vmax.f32 %v176_v21, 0.0 }
 0x198   :  { %v181_v25 = vpop.permute.xlu0 %180 }
 0x199   :  { %v183_v26 = vmul.f32 %v181_v25, %v105_v2 }
 0x19b   :  { %v184_v27 = vadd.f32 %v183_v26, %v142_v13 }
 0x19d   :  { %v185_v28 = vmax.f32 %v184_v27, 0.0 }
 0x19f   :  { %187 = vrot.lane.b32.xlu1 %v185_v28, %s418_s10 }
 0x211   :  { %v188_v31 = vpop.permute.xlu1 %187 }
 0x212   :  { %v190_v32 = vadd.f32 %v188_v31, %v178_v30 }
 0x214   :  { %244 = vmatmul.msk.f32.vlgmr.msra.gmra.mxu2 %vm114_vm0, %v190_v32 }
 0x297   :  { %v219_v34 = vpop.f32.mrf.mxu2 }
 0x298   :  { %v220_v35 = vadd.f32 %v257_v33, %v219_v34 }
 0x29a   :  { %222 = vst [vmem:[#allocation11] sm:$0xff] %v220_v35 }
 0x29b   :  { %233 = dma.vmem_to_hbm [thread:$0]  %s229_s12, 128, %s231_s15, [#allocation4]  }
 0x29c   :  { %408 = dma.done.wait [#allocation4], 128  }
 0x29d   :  { %409 = vsyncadd [#allocation4], 4294967168 }
 0x29e   :  { %238 = vsyncpa [#allocation3], 1 }
 0x29f   :  { %239 = vsyncpa [#allocation6], 1 }
 0x2a0   :  { %240 = vsyncpa [#allocation9], 1 }
 0x2a1   :  { %241 = vsyncpa [#allocation4], 1 }

</bundles_post_ra>
